<compile_context>
chip_gen: v7x
topology: tpu7x:2x2x1
jax: 0.10.0
libtpu: 0.0.40
codegen_flags: <defaults>
</compile_context>

<pallas_src>
import functools
import math

import jax
import jax.numpy as jnp
import numpy as np
from jax.experimental import pallas as pl
from jax.experimental.pallas import tpu as pltpu


def _round_up(x, m):
    return (x + m - 1) // m * m


def _cdiv(a, b):
    return -(-a // b)


# ----------------------------------------------------------------------------
# Kernel: one grid step = (one batch tile) x (one conv layer).
#   l == 0          : conv_input = emb2hid(embedded) -> persistent VMEM scratch
#   every l         : fused im2col conv1d + GLU + residual (x carried in scratch)
#   l == n_layers-1 : conved = hid2emb(x); combined = (conved + embedded)*scale
# ----------------------------------------------------------------------------
def _encoder_kernel(emb_ref, mask_ref, w_e2h_ref, b_e2h_ref, conv_w_ref,
                    conv_b_ref, w_h2e_ref, b_h2e_ref,       # inputs
                    conved_ref, combined_ref,               # outputs
                    x_ref,                                  # scratch (M, Hp) f32
                    *, n_layers, kernel_size, mm_dtype):
    layer = pl.program_id(1)
    M, Hp = x_ref.shape
    pad = (kernel_size - 1) // 2
    scale = jnp.float32(math.sqrt(0.5))

    # --- first layer step: conv_input = emb2hid(embedded) --------------------
    @pl.when(layer == 0)
    def _emb2hid():
        x_ref[...] = (jnp.dot(emb_ref[...].astype(mm_dtype), w_e2h_ref[...],
                              preferred_element_type=jnp.float32)
                      + b_e2h_ref[...])

    x = x_ref[...]                                        # (M, Hp) f32 conv_input

    # --- fused im2col conv1d: K shifted bf16 windows -> one MXU matmul -------
    # Static pltpu.roll along the sublane (row) axis builds window k; every
    # window is cast to bf16 before the concat so the (M, K*Hp) slab is
    # half-width.  The host-precomputed 0/1 mask slab zeroes rows a roll wraps
    # across sequence / batch-tile / padded-tail boundaries (= conv zero pad).
    wins = []
    for k in range(kernel_size):
        off = k - pad                       # window row t reads x[t + off]
        if off == 0:
            wins.append(x.astype(mm_dtype))
        else:
            wins.append(pltpu.roll(x, (-off) % M, 0).astype(mm_dtype))
    slab = jnp.concatenate(wins, axis=-1) * mask_ref[...]        # (M, K*Hp) bf16

    out = jnp.dot(slab, conv_w_ref[0],
                  preferred_element_type=jnp.float32) + conv_b_ref[0]  # (M, 2*Hp)

    # GLU over channels, residual + scale (all f32 on the VPU / EUP).
    a = out[:, :Hp]
    g = out[:, Hp:]
    x_new = (a * jax.nn.sigmoid(g) + x) * scale
    x_ref[...] = x_new

    # --- last layer step: hid2emb + combined ----------------------------------
    @pl.when(layer == n_layers - 1)
    def _hid2emb():
        conved = (jnp.dot(x_new.astype(mm_dtype), w_h2e_ref[...],
                          preferred_element_type=jnp.float32)
                  + b_h2e_ref[...])
        conved_ref[...] = conved
        combined_ref[...] = (conved + emb_ref[...]) * scale


# ----------------------------------------------------------------------------
# Tiling / VMEM plan
# ----------------------------------------------------------------------------
def _plan_tiles(B, S_pad, Ep, Hp, K, *, target_rows=512, budget_bytes=40 << 20):
    """Batch tile (rows per MXU push) + VMEM limit from the per-step footprint."""
    b_tile = max(1, min(B, _cdiv(target_rows, S_pad)))

    def est(bt):
        m = bt * S_pad
        n = 0
        n += 2 * m * Ep * 4                      # embedded block (2 bufs)
        n += 2 * 2 * m * Ep * 4                  # conved + combined blocks (2 bufs)
        n += 2 * m * K * Hp * 2                  # window-mask slab (2 bufs)
        n += 2 * 2 * Ep * Hp * 2                 # w_e2h + w_h2e (bf16, 2 bufs)
        n += 2 * K * Hp * 2 * Hp * 2             # conv_w layer slab (bf16, 2 bufs)
        n += 2 * (Hp + Ep + 2 * Hp) * 4 * 8      # biases (sublane-padded, 2 bufs)
        n += m * Hp * 4                          # persistent x scratch
        n += m * (K * Hp * 2 + 2 * Hp * 4 + Hp * 4)   # in-kernel temporaries
        return n

    while b_tile > 1 and est(b_tile) > budget_bytes:
        b_tile -= 1
    # cap at 60 MiB so the same plan also fits v7x's 64 MiB physical VMEM;
    # on v5e/v6e (128 MiB physical) the budget above could be raised further.
    vmem_limit = max(32 << 20, min(int(1.5 * est(b_tile)), 60 << 20))
    return b_tile, vmem_limit


# ----------------------------------------------------------------------------
# Wrapper: embedding lookups (glue), padding, weight re-layout, pallas_call.
# ----------------------------------------------------------------------------
def encoder_forward(src, params, *, n_layers, kernel_size,
                    matmul_dtype=jnp.bfloat16):
    B, S = src.shape
    E = params["tok_emb"].shape[1]
    H = params["w_e2h"].shape[1]
    K, L = kernel_size, n_layers
    Ep = _round_up(E, 128)                 # lane-dense embedding channels
    Hp = _round_up(H, 128)                 # lane-dense hidden channels
    S_pad = _round_up(S, 8)                # sublane-aligned sequence length

    # token + position embeddings (gather stays in plain JAX glue; dropout=id).
    tok = jnp.take(params["tok_emb"], src, axis=0)                   # (B, S, E)
    pos = jnp.take(params["pos_emb"], jnp.arange(S), axis=0)[None]   # (1, S, E)
    embedded = (tok + pos).astype(jnp.float32)

    b_tile, vmem_limit = _plan_tiles(B, S_pad, Ep, Hp, K)
    B_pad = _round_up(B, b_tile)
    M_tile = b_tile * S_pad
    n_btiles = B_pad // b_tile
    # TODO(synk): on v7x keep n_btiles >= 2 (or use pltpu.CORE_PARALLEL) so both
    #             TensorCores get work once B is large enough.

    # pad + flatten batch*seq: every MXU push sees M = b_tile*S_pad rows.
    emb_p = jnp.pad(embedded, ((0, B_pad - B), (0, S_pad - S), (0, Ep - E)))
    emb_flat = emb_p.reshape(B_pad * S_pad, Ep)

    # weights: channel-pad to 128, cast MXU operands to bf16 host-side.
    w_e2h = jnp.pad(params["w_e2h"], ((0, Ep - E), (0, Hp - H))).astype(matmul_dtype)
    b_e2h = jnp.pad(params["b_e2h"], ((0, 0), (0, Hp - H)))
    w_h2e = jnp.pad(params["w_h2e"], ((0, Hp - H), (0, Ep - E))).astype(matmul_dtype)
    b_h2e = jnp.pad(params["b_h2e"], ((0, 0), (0, Ep - E)))

    # conv weight [L, K, H, 2H] -> padded im2col layout [L, K*Hp, 2*Hp]:
    # output cols [0:H] = GLU "a" half, cols [Hp:Hp+H] = gate half.
    cw = params["conv_w"]
    cwp = jnp.zeros((L, K, Hp, 2 * Hp), jnp.float32)
    cwp = cwp.at[:, :, :H, :H].set(cw[..., :H])
    cwp = cwp.at[:, :, :H, Hp:Hp + H].set(cw[..., H:])
    cwp = cwp.reshape(L, K * Hp, 2 * Hp).astype(matmul_dtype)

    cb = params["conv_b"]
    cbp = jnp.zeros((L, 1, 2 * Hp), jnp.float32)
    cbp = cbp.at[:, 0, :H].set(cb[:, :H])
    cbp = cbp.at[:, 0, Hp:Hp + H].set(cb[:, H:])

    # 0/1 window mask (layer- & tile-invariant, hoisted to the host): row r of a
    # tile is sequence position r % S_pad; window k (offset off = k - pad) is
    # valid iff 0 <= pos + off < S (TRUE length), which also zeroes rows a
    # pltpu.roll wraps across batch-tile / padded-tail boundaries.
    pad = (K - 1) // 2
    pos_in_seq = np.arange(M_tile) % S_pad
    mask_cols = []
    for k in range(K):
        off = k - pad
        ok = ((pos_in_seq + off >= 0) & (pos_in_seq + off < S)).astype(np.float32)
        mask_cols.append(np.repeat(ok[:, None], Hp, axis=1))
    win_mask = jnp.asarray(np.concatenate(mask_cols, axis=1)).astype(matmul_dtype)

    kernel = functools.partial(_encoder_kernel, n_layers=L, kernel_size=K,
                               mm_dtype=matmul_dtype)

    # TODO(synk): single-buffer the constant-index weight BlockSpecs with
    #             pipeline_mode=pl.Buffered(1) to halve their VMEM on v7x.
    conved_f, combined_f = pl.pallas_call(
        kernel,
        out_shape=(jax.ShapeDtypeStruct((B_pad * S_pad, Ep), jnp.float32),
                   jax.ShapeDtypeStruct((B_pad * S_pad, Ep), jnp.float32)),
        grid=(n_btiles, L),
        in_specs=[
            pl.BlockSpec((M_tile, Ep), lambda b, l: (b, 0)),            # embedded
            pl.BlockSpec((M_tile, K * Hp), lambda b, l: (0, 0)),        # win mask
            pl.BlockSpec((Ep, Hp), lambda b, l: (0, 0)),                # w_e2h
            pl.BlockSpec((1, Hp), lambda b, l: (0, 0)),                 # b_e2h
            pl.BlockSpec((1, K * Hp, 2 * Hp), lambda b, l: (l, 0, 0)),  # conv_w[l]
            pl.BlockSpec((1, 1, 2 * Hp), lambda b, l: (l, 0, 0)),       # conv_b[l]
            pl.BlockSpec((Hp, Ep), lambda b, l: (0, 0)),                # w_h2e
            pl.BlockSpec((1, Ep), lambda b, l: (0, 0)),                 # b_h2e
        ],
        out_specs=(pl.BlockSpec((M_tile, Ep), lambda b, l: (b, 0)),
                   pl.BlockSpec((M_tile, Ep), lambda b, l: (b, 0))),
        scratch_shapes=[pltpu.VMEM((M_tile, Hp), jnp.float32)],
        compiler_params=pltpu.CompilerParams(
            dimension_semantics=("parallel", "arbitrary"),
            vmem_limit_bytes=vmem_limit),
    )(emb_flat, win_mask, w_e2h, b_e2h, cwp, cbp, w_h2e, b_h2e)

    conved = conved_f.reshape(B_pad, S_pad, Ep)[:B, :S, :E]
    combined = combined_f.reshape(B_pad, S_pad, Ep)[:B, :S, :E]
    return conved, combined, embedded


# ----------------------------------------------------------------------------
# Deterministic synthetic parameter init (shapes follow Encoder.__init__)
# ----------------------------------------------------------------------------
def init_params(key, input_dim, emb_dim, hid_dim, n_layers, kernel_size,
                max_sentence_len):
    ks = jax.random.split(key, 8)
    return {
        "tok_emb": 0.1 * jax.random.normal(ks[0], (input_dim, emb_dim), jnp.float32),
        "pos_emb": 0.1 * jax.random.normal(ks[1], (max_sentence_len, emb_dim), jnp.float32),
        "w_e2h": (1.0 / math.sqrt(emb_dim)) *
                 jax.random.normal(ks[2], (emb_dim, hid_dim), jnp.float32),
        "b_e2h": 0.01 * jax.random.normal(ks[3], (1, hid_dim), jnp.float32),
        # conv weight laid out as [n_layers, K, H_in, 2*H_out]
        "conv_w": (1.0 / math.sqrt(hid_dim * kernel_size)) *
                  jax.random.normal(ks[4], (n_layers, kernel_size, hid_dim, 2 * hid_dim),
                                    jnp.float32),
        "conv_b": 0.01 * jax.random.normal(ks[5], (n_layers, 2 * hid_dim), jnp.float32),
        "w_h2e": (1.0 / math.sqrt(hid_dim)) *
                 jax.random.normal(ks[6], (hid_dim, emb_dim), jnp.float32),
        "b_h2e": 0.01 * jax.random.normal(ks[7], (1, emb_dim), jnp.float32),
    }


# ----------------------------------------------------------------------------
# Pure-JAX reference (mirrors the PyTorch forward, eval mode).
# ----------------------------------------------------------------------------
def encoder_reference(embedded, params, *, n_layers, kernel_size,
                      matmul_dtype=jnp.float32):
    scale = jnp.float32(math.sqrt(0.5))
    pad = (kernel_size - 1) // 2
    H = params["w_e2h"].shape[1]

    def mm(a, b):
        return jnp.dot(a.astype(matmul_dtype), b.astype(matmul_dtype),
                       preferred_element_type=jnp.float32)

    x = mm(embedded, params["w_e2h"]) + params["b_e2h"]          # (B, S, H)
    for i in range(n_layers):
        xp = jnp.pad(x, ((0, 0), (pad, pad), (0, 0)))
        out = jnp.zeros(x.shape[:2] + (2 * H,), jnp.float32) + params["conv_b"][i]
        for k in range(kernel_size):
            out = out + mm(xp[:, k:k + x.shape[1], :], params["conv_w"][i, k])
        glu = out[..., :H] * jax.nn.sigmoid(out[..., H:])
        x = (glu + x) * scale
    conved = mm(x, params["w_h2e"]) + params["b_h2e"]
    combined = (conved + embedded) * scale
    return conved, combined


if __name__ == "__main__":
    # small shapes consistent with the module
    B, S = 2, 8
    input_dim, emb_dim, hid_dim = 50, 32, 32
    n_layers, kernel_size, max_sentence_len = 2, 3, 100

    key = jax.random.PRNGKey(0)
    pkey, skey = jax.random.split(key)
    params = init_params(pkey, input_dim, emb_dim, hid_dim, n_layers,
                         kernel_size, max_sentence_len)
    src = jax.random.randint(skey, (B, S), 0, input_dim, dtype=jnp.int32)

    conved, combined, embedded = encoder_forward(
        src, params, n_layers=n_layers, kernel_size=kernel_size,
        matmul_dtype=jnp.bfloat16)
    jax.block_until_ready((conved, combined))

    # tight check against a reference with the same bf16-matmul rounding
    ref_c_bf, ref_m_bf = encoder_reference(
        embedded, params, n_layers=n_layers, kernel_size=kernel_size,
        matmul_dtype=jnp.bfloat16)
    np.testing.assert_allclose(np.asarray(conved), np.asarray(ref_c_bf),
                               rtol=1e-2, atol=1e-2)
    np.testing.assert_allclose(np.asarray(combined), np.asarray(ref_m_bf),
                               rtol=1e-2, atol=1e-2)

    # loose check against the full-f32 reference (module semantics)
    with jax.default_matmul_precision("float32"):
        ref_c, ref_m = encoder_reference(
            embedded, params, n_layers=n_layers, kernel_size=kernel_size,
            matmul_dtype=jnp.float32)
    np.testing.assert_allclose(np.asarray(conved), np.asarray(ref_c),
                               rtol=3e-2, atol=3e-2)
    np.testing.assert_allclose(np.asarray(combined), np.asarray(ref_m),
                               rtol=3e-2, atol=3e-2)

    print("KERNEL_OK")
</pallas_src>

<mosaic_0001>
module attributes {stable_mosaic.version = 11 : i64} {
  func.func @_encoder_kernel(%arg0: i32, %arg1: i32, %arg2: memref<16x128xf32, #tpu.memory_space<vmem>>, %arg3: memref<16x384xbf16, #tpu.memory_space<vmem>>, %arg4: memref<128x128xbf16, #tpu.memory_space<vmem>>, %arg5: memref<1x128xf32, #tpu.memory_space<vmem>>, %arg6: memref<1x384x256xbf16, #tpu.memory_space<vmem>>, %arg7: memref<1x1x256xf32, #tpu.memory_space<vmem>>, %arg8: memref<128x128xbf16, #tpu.memory_space<vmem>>, %arg9: memref<1x128xf32, #tpu.memory_space<vmem>>, %arg10: memref<16x128xf32, #tpu.memory_space<vmem>>, %arg11: memref<16x128xf32, #tpu.memory_space<vmem>>, %arg12: memref<16x128xf32, #tpu.memory_space<vmem>>) attributes {dimension_semantics = [#tpu.dimension_semantics<parallel>, #tpu.dimension_semantics<arbitrary>], iteration_bounds = array<i64: 1, 2>, scalar_prefetch = 0 : i64, scratch_operands = 1 : i64, tpu.core_type = #tpu.core_type<tc>, window_params = [{transform_indices = @transform_0, window_bounds = array<i64: 16, 128>}, {pipeline_mode = #tpu.pipeline_mode<synchronous>, transform_indices = @transform_1, window_bounds = array<i64: 16, 384>}, {pipeline_mode = #tpu.pipeline_mode<synchronous>, transform_indices = @transform_2, window_bounds = array<i64: 128, 128>}, {pipeline_mode = #tpu.pipeline_mode<synchronous>, transform_indices = @transform_3, window_bounds = array<i64: 1, 128>}, {transform_indices = @transform_4, window_bounds = array<i64: 1, 384, 256>}, {transform_indices = @transform_5, window_bounds = array<i64: 1, 1, 256>}, {pipeline_mode = #tpu.pipeline_mode<synchronous>, transform_indices = @transform_6, window_bounds = array<i64: 128, 128>}, {pipeline_mode = #tpu.pipeline_mode<synchronous>, transform_indices = @transform_7, window_bounds = array<i64: 1, 128>}, {transform_indices = @transform_8, window_bounds = array<i64: 16, 128>}, {transform_indices = @transform_9, window_bounds = array<i64: 16, 128>}]} {
    %c0_i32 = arith.constant 0 : i32
    %0 = arith.cmpi eq, %arg1, %c0_i32 : i32
    %1 = arith.extui %0 : i1 to i32
    %c0_i32_0 = arith.constant 0 : i32
    %2 = arith.cmpi ne, %1, %c0_i32_0 : i32
    scf.if %2 {
      %c0_17 = arith.constant 0 : index
      %c0_18 = arith.constant 0 : index
      %34 = vector.load %arg2[%c0_17, %c0_18] : memref<16x128xf32, #tpu.memory_space<vmem>>, vector<16x128xf32>
      %35 = arith.truncf %34 : vector<16x128xf32> to vector<16x128xbf16>
      %c0_19 = arith.constant 0 : index
      %c0_20 = arith.constant 0 : index
      %36 = vector.load %arg4[%c0_19, %c0_20] : memref<128x128xbf16, #tpu.memory_space<vmem>>, vector<128x128xbf16>
      %cst_21 = arith.constant dense<0.000000e+00> : vector<16x128xf32>
      %37 = tpu.matmul %35, %36, %cst_21 {dimension_numbers = #tpu.dot_dimension_numbers<[1], [0], [0], [1], [0, 0, 1, 1], [], []>} : vector<16x128xbf16>, vector<128x128xbf16>, vector<16x128xf32> -> vector<16x128xf32>
      %c0_22 = arith.constant 0 : index
      %c0_23 = arith.constant 0 : index
      %38 = vector.load %arg5[%c0_22, %c0_23] : memref<1x128xf32, #tpu.memory_space<vmem>>, vector<1x128xf32>
      %39 = vector.broadcast %38 : vector<1x128xf32> to vector<16x128xf32>
      %40 = arith.addf %37, %39 : vector<16x128xf32>
      %c0_24 = arith.constant 0 : index
      %c0_25 = arith.constant 0 : index
      %41 = vector.load %arg12[%c0_24, %c0_25] : memref<16x128xf32, #tpu.memory_space<vmem>>, vector<16x128xf32>
      tpu.vector_store %arg12[%c0_24, %c0_25], %40 {strides = array<i32>} : memref<16x128xf32, #tpu.memory_space<vmem>>, vector<16x128xf32>,
    } else {
    }
    %c0 = arith.constant 0 : index
    %c0_1 = arith.constant 0 : index
    %3 = vector.load %arg12[%c0, %c0_1] : memref<16x128xf32, #tpu.memory_space<vmem>>, vector<16x128xf32>
    %c1_i32 = arith.constant 1 : i32
    %4 = tpu.dynamic_rotate %3 by %c1_i32 dim 0 : vector<16x128xf32>, i32 -> vector<16x128xf32>
    %5 = arith.truncf %4 : vector<16x128xf32> to vector<16x128xbf16>
    %6 = arith.truncf %3 : vector<16x128xf32> to vector<16x128xbf16>
    %c15_i32 = arith.constant 15 : i32
    %7 = tpu.dynamic_rotate %3 by %c15_i32 dim 0 : vector<16x128xf32>, i32 -> vector<16x128xf32>
    %8 = arith.truncf %7 : vector<16x128xf32> to vector<16x128xbf16>
    %9 = tpu.concatenate %5, %6, %8 in 1 : vector<16x128xbf16>, vector<16x128xbf16>, vector<16x128xbf16> -> vector<16x384xbf16>
    %c0_2 = arith.constant 0 : index
    %c0_3 = arith.constant 0 : index
    %10 = vector.load %arg3[%c0_2, %c0_3] : memref<16x384xbf16, #tpu.memory_space<vmem>>, vector<16x384xbf16>
    %11 = arith.mulf %9, %10 : vector<16x384xbf16>
    %c0_4 = arith.constant 0 : index
    %c0_5 = arith.constant 0 : index
    %c0_6 = arith.constant 0 : index
    %12 = vector.load %arg6[%c0_4, %c0_5, %c0_6] : memref<1x384x256xbf16, #tpu.memory_space<vmem>>, vector<1x384x256xbf16>
    %13 = vector.shape_cast %12 : vector<1x384x256xbf16> to vector<384x256xbf16>
    %cst = arith.constant dense<0.000000e+00> : vector<16x256xf32>
    %14 = tpu.matmul %11, %13, %cst {dimension_numbers = #tpu.dot_dimension_numbers<[1], [0], [0], [1], [0, 0, 1, 1], [], []>} : vector<16x384xbf16>, vector<384x256xbf16>, vector<16x256xf32> -> vector<16x256xf32>
    %c0_7 = arith.constant 0 : index
    %c0_8 = arith.constant 0 : index
    %c0_9 = arith.constant 0 : index
    %15 = vector.load %arg7[%c0_7, %c0_8, %c0_9] : memref<1x1x256xf32, #tpu.memory_space<vmem>>, vector<1x1x256xf32>
    %16 = vector.shape_cast %15 : vector<1x1x256xf32> to vector<1x256xf32>
    %17 = vector.broadcast %16 : vector<1x256xf32> to vector<16x256xf32>
    %18 = arith.addf %14, %17 : vector<16x256xf32>
    %19 = vector.extract_strided_slice %18 {offsets = [0, 0], sizes = [16, 128], strides = [1, 1]} : vector<16x256xf32> to vector<16x128xf32>
    %20 = vector.extract_strided_slice %18 {offsets = [0, 128], sizes = [16, 128], strides = [1, 1]} : vector<16x256xf32> to vector<16x128xf32>
    %21 = arith.negf %20 : vector<16x128xf32>
    %22 = math.exp %21 : vector<16x128xf32>
    %cst_10 = arith.constant 1.000000e+00 : f32
    %23 = vector.broadcast %cst_10 : f32 to vector<16x128xf32>
    %24 = arith.addf %23, %22 : vector<16x128xf32>
    %25 = arith.divf %23, %24 : vector<16x128xf32>
    %26 = arith.mulf %19, %25 : vector<16x128xf32>
    %27 = arith.addf %26, %3 : vector<16x128xf32>
    %cst_11 = arith.constant 0.707106769 : f32
    %28 = vector.broadcast %cst_11 : f32 to vector<16x128xf32>
    %29 = arith.mulf %27, %28 : vector<16x128xf32>
    %c0_12 = arith.constant 0 : index
    %c0_13 = arith.constant 0 : index
    %30 = vector.load %arg12[%c0_12, %c0_13] : memref<16x128xf32, #tpu.memory_space<vmem>>, vector<16x128xf32>
    tpu.vector_store %arg12[%c0_12, %c0_13], %29 {strides = array<i32>} : memref<16x128xf32, #tpu.memory_space<vmem>>, vector<16x128xf32>,
    %c1_i32_14 = arith.constant 1 : i32
    %31 = arith.cmpi eq, %arg1, %c1_i32_14 : i32
    %32 = arith.extui %31 : i1 to i32
    %cst_15 = arith.constant 0.707106769 : f32
    %c0_i32_16 = arith.constant 0 : i32
    %33 = arith.cmpi ne, %32, %c0_i32_16 : i32
    scf.if %33 {
      %34 = arith.truncf %29 : vector<16x128xf32> to vector<16x128xbf16>
      %c0_17 = arith.constant 0 : index
      %c0_18 = arith.constant 0 : index
      %35 = vector.load %arg8[%c0_17, %c0_18] : memref<128x128xbf16, #tpu.memory_space<vmem>>, vector<128x128xbf16>
      %cst_19 = arith.constant dense<0.000000e+00> : vector<16x128xf32>
      %36 = tpu.matmul %34, %35, %cst_19 {dimension_numbers = #tpu.dot_dimension_numbers<[1], [0], [0], [1], [0, 0, 1, 1], [], []>} : vector<16x128xbf16>, vector<128x128xbf16>, vector<16x128xf32> -> vector<16x128xf32>
      %c0_20 = arith.constant 0 : index
      %c0_21 = arith.constant 0 : index
      %37 = vector.load %arg9[%c0_20, %c0_21] : memref<1x128xf32, #tpu.memory_space<vmem>>, vector<1x128xf32>
      %38 = vector.broadcast %37 : vector<1x128xf32> to vector<16x128xf32>
      %39 = arith.addf %36, %38 : vector<16x128xf32>
      %c0_22 = arith.constant 0 : index
      %c0_23 = arith.constant 0 : index
      %40 = vector.load %arg10[%c0_22, %c0_23] : memref<16x128xf32, #tpu.memory_space<vmem>>, vector<16x128xf32>
      tpu.vector_store %arg10[%c0_22, %c0_23], %39 {strides = array<i32>} : memref<16x128xf32, #tpu.memory_space<vmem>>, vector<16x128xf32>,
      %c0_24 = arith.constant 0 : index
      %c0_25 = arith.constant 0 : index
      %41 = vector.load %arg2[%c0_24, %c0_25] : memref<16x128xf32, #tpu.memory_space<vmem>>, vector<16x128xf32>
      %42 = arith.addf %39, %41 : vector<16x128xf32>
      %43 = vector.broadcast %cst_15 : f32 to vector<16x128xf32>
      %44 = arith.mulf %42, %43 : vector<16x128xf32>
      %c0_26 = arith.constant 0 : index
      %c0_27 = arith.constant 0 : index
      %45 = vector.load %arg11[%c0_26, %c0_27] : memref<16x128xf32, #tpu.memory_space<vmem>>, vector<16x128xf32>
      tpu.vector_store %arg11[%c0_26, %c0_27], %44 {strides = array<i32>} : memref<16x128xf32, #tpu.memory_space<vmem>>, vector<16x128xf32>,
    } else {
    }
    return
  }
  func.func @transform_0(%arg0: i32, %arg1: i32) -> (i32, i32) {
    %c0_i32 = arith.constant 0 : i32
    %c0_i32_0 = arith.constant 0 : i32
    return %arg0, %c0_i32 : i32, i32
  }
  func.func @transform_1(%arg0: i32, %arg1: i32) -> (i32, i32) {
    %c0_i32 = arith.constant 0 : i32
    %c0_i32_0 = arith.constant 0 : i32
    %c0_i32_1 = arith.constant 0 : i32
    return %c0_i32, %c0_i32_0 : i32, i32
  }
  func.func @transform_2(%arg0: i32, %arg1: i32) -> (i32, i32) {
    %c0_i32 = arith.constant 0 : i32
    %c0_i32_0 = arith.constant 0 : i32
    %c0_i32_1 = arith.constant 0 : i32
    return %c0_i32, %c0_i32_0 : i32, i32
  }
  func.func @transform_3(%arg0: i32, %arg1: i32) -> (i32, i32) {
    %c0_i32 = arith.constant 0 : i32
    %c0_i32_0 = arith.constant 0 : i32
    %c0_i32_1 = arith.constant 0 : i32
    return %c0_i32, %c0_i32_0 : i32, i32
  }
  func.func @transform_4(%arg0: i32, %arg1: i32) -> (i32, i32, i32) {
    %c0_i32 = arith.constant 0 : i32
    %c0_i32_0 = arith.constant 0 : i32
    %c0_i32_1 = arith.constant 0 : i32
    return %arg1, %c0_i32, %c0_i32_0 : i32, i32, i32
  }
  func.func @transform_5(%arg0: i32, %arg1: i32) -> (i32, i32, i32) {
    %c0_i32 = arith.constant 0 : i32
    %c0_i32_0 = arith.constant 0 : i32
    %c0_i32_1 = arith.constant 0 : i32
    return %arg1, %c0_i32, %c0_i32_0 : i32, i32, i32
  }
  func.func @transform_6(%arg0: i32, %arg1: i32) -> (i32, i32) {
    %c0_i32 = arith.constant 0 : i32
    %c0_i32_0 = arith.constant 0 : i32
    %c0_i32_1 = arith.constant 0 : i32
    return %c0_i32, %c0_i32_0 : i32, i32
  }
  func.func @transform_7(%arg0: i32, %arg1: i32) -> (i32, i32) {
    %c0_i32 = arith.constant 0 : i32
    %c0_i32_0 = arith.constant 0 : i32
    %c0_i32_1 = arith.constant 0 : i32
    return %c0_i32, %c0_i32_0 : i32, i32
  }
  func.func @transform_8(%arg0: i32, %arg1: i32) -> (i32, i32) {
    %c0_i32 = arith.constant 0 : i32
    %c0_i32_0 = arith.constant 0 : i32
    return %arg0, %c0_i32 : i32, i32
  }
  func.func @transform_9(%arg0: i32, %arg1: i32) -> (i32, i32) {
    %c0_i32 = arith.constant 0 : i32
    %c0_i32_0 = arith.constant 0 : i32
    return %arg0, %c0_i32 : i32, i32
  }
}

</mosaic_0001>

<bundles_post_ra>
// kernel: tpu_custom_call.1
= control target key start
LH: loop header
LB: loop body
LE: loop exit
PB: predicated region body
PF: predicated region fallthrough
CT: control target
= control target key end

     0   :  { %s2383_s0 = inlined_call_operand.hbm [shape: f32[16,128], index: 0, kind: input, shape index: {}]   ;;  %s2384_s1 = inlined_call_operand.hbm [shape: bf16[16,384], index: 1, kind: input, shape index: {}]   ;;  %s2385_s2 = inlined_call_operand.hbm [shape: bf16[128,128], index: 2, kind: input, shape index: {}]   ;;  %s2386_s3 = inlined_call_operand.vmem [shape: f32[1,128], index: 3, kind: input, shape index: {}]   ;;  %s2387_s4 = inlined_call_operand.hbm [shape: bf16[2,384,256], index: 4, kind: input, shape index: {}]   ;;  %s2388_s5 = inlined_call_operand.vmem [shape: f32[2,1,256], index: 5, kind: input, shape index: {}]   ;;  %s2389_s6 = inlined_call_operand.hbm [shape: bf16[128,128], index: 6, kind: input, shape index: {}]   ;;  %s2390_s7 = inlined_call_operand.vmem [shape: f32[1,128], index: 7, kind: input, shape index: {}]   ;;  %s2391_s8 = inlined_call_operand.hbm [shape: f32[16,128], index: 8, kind: output, shape index: {0}]   ;;  %s2392_s9 = inlined_call_operand.hbm [shape: f32[16,128], index: 9, kind: output, shape index: {1}]  }
   0x1   :  { %2400 = sst [smem:[#allocation21_spill]] %s2384_s1 }
   0x2   :  { %2401 = sst [smem:[#allocation22_spill]] %s2391_s8 }
   0x3   :  { %2402 = sst [smem:[#allocation23_spill]] %s2392_s9 }
   0x4   :  { %15 = vsyncpa [#allocation4], 0 }
   0x5   :  { %16 = vsyncpa [#allocation7], 0 }
   0x6   :  { %17 = vsyncpa [#allocation10], 0 }
   0x7   :  { %19 = vsyncpa [#allocation10 + $0x1], 0 }
   0x8   :  { %20 = vsyncpa [#allocation5], 0 }
   0x9   :  { %21 = vsyncpa [#allocation14], 0  ;;  %s2018_s30 = smov 0   ;;  %s2020_s10 = smov 0  }
   0xa   :  { %s2022_s11 = smov 0   ;;  %s2024_s12 = smov 0  }
   0xb   :  { %s2026_s13 = smov 0   ;;  %s2028_s14 = smov 0  }
   0xc LB: > { %s2047_s15 = sadd.s32 4294967295, %s1946_s14   ;;  %p148_p0 = scmp.ne.s32.totalorder %s1930_s10, %s1926_s30  ;;  %s1946_s14 = sphi %s2028_s14, %s27_s14   ;;  %s1942_s13 = sphi %s2026_s13, %s2425_s13   ;;  %s1938_s12 = sphi %s2024_s12, %s2424_s12   ;;  %s1934_s11 = sphi %s2022_s11, %s2423_s11   ;;  %s1930_s10 = sphi %s2020_s10, %s2422_s10   ;;  %s1926_s30 = sphi %s2018_s30, %s2421_s30  }
   0xd   : > { %p2393_p1 = scmp.eq.s32.totalorder %s2047_s15, 0  ;;  %p1298_p2 = scmp.ge.s32.totalorder %s1946_s14, 1 }
   0xe   : > { %p279_p3 = scmp.lt.s32.totalorder %s1946_s14, 3  ;;  %s1948_s18 = smov [#allocation6]  }
   0xf   : > { %p2055_p4 = por %p2393_p1, %p148_p0  ;;  %s307_s19 = sshll.u32 %s1948_s18, 4  ;;  %s308_s19 = int_to_ptr.vmem [resolvable:$true] %s307_s19 }
  0x10   : > { %p2059_p5 = pnand %p1298_p2, %p279_p3  ;;  %s1949_s21 = smov [#allocation11]  }
  0x11   : > { %s2403_s16 = scalar_select %p2055_p4, 1, 0 }
  0x12   : > { %s2404_s17 = scalar_select %p2059_p5, 1, 0 }
  0x13   : > { %p1485_p6 = pneg %p2059_p5  ;;  %s336_s22 = sshll.u32 %s1949_s21, 4  ;;  %s337_s22 = int_to_ptr.vmem [resolvable:$true] %s336_s22 }
  0x14   : > { %s2406_s1 = sld [smem:[#allocation21_spill]] }
  0x15   : > { %p2067_p7 = pnand %p1485_p6, %p2393_p1 }
  0x17   : > { %p2079_p9 = pneg %p2067_p7 }
  0x1a   : > { %s1682_s25 = scalar_lea.hbm %s2406_s1, 384 }
  0x1b   : > { %p1683_p8 = scmp.ne.s32.totalorder %s2406_s1, %s1682_s25  ;;  %p1689_p12 = scmp.lt.u32.totalorder %s1682_s25, %s2406_s1 }
  0x1d   : > { %p1685_p10 = pnand %p2079_p9, %p1683_p8 }
  0x1f   : > { %p1686_p11 = pneg %p1685_p10 }
  0x21   : > { %p1691_p13 = pnand %p1689_p12, %p1686_p11 }
  0x23   : > { %1694 = shalt.err (!%p1691_p13)
}
  0x24   : > { %s1695_s18 = scalar_lea.vmem %s308_s19, 384  ;;  %p1703_p6 = scmp.lt.s32.totalorder %s308_s19, %s308_s19 }
  0x25   : > { %p1696_p0 = scmp.ne.s32.totalorder %s308_s19, %s1695_s18  ;;  %p1704_p1 = scmp.lt.s32.totalorder %s1695_s18, %s1695_s18 }
  0x27   : > { %p1698_p2 = pnand %p1696_p0, %p2079_p9  ;;  %p1705_p4 = por %p1704_p1, %p1703_p6 }
  0x29   : > { %p1699_p3 = pneg %p1698_p2 }
  0x2b   : > { %p1706_p5 = pnand %p1705_p4, %p1699_p3 }
  0x2d   : > { %1709 = shalt.err (!%p1706_p5)
}
  0x2e   : > { %s1950_s21 = smov 192   ;;  %s1951_s23 = smov 12  }
  0x2f   : > { %1491 = dma.hbm_to_vmem [thread:$0]  (!%p2067_p7), %s2406_s1, 384, %s308_s19, [#allocation7], %s1950_s21, %s1950_s21, %s1951_s23  }
  0x30   : > { %s1710_s29 = scalar_lea.hbm %s2389_s6, 1024 }
  0x31   : > { %p1711_p1 = scmp.ne.s32.totalorder %s2389_s6, %s1710_s29  ;;  %p1717_p8 = scmp.lt.u32.totalorder %s1710_s29, %s2389_s6 }
  0x33   : > { %p1713_p4 = pnand %p1711_p1, %p2079_p9 }
  0x35   : > { %p1714_p5 = pneg %p1713_p4 }
  0x37   : > { %p1719_p10 = pnand %p1717_p8, %p1714_p5 }
  0x39   : > { %1722 = shalt.err (!%p1719_p10)
}
  0x3a   : > { %s1723_s24 = scalar_lea.vmem %s337_s22, 1024  ;;  %p1731_p0 = scmp.lt.s32.totalorder %s337_s22, %s337_s22 }
  0x3b   : > { %p1724_p11 = scmp.ne.s32.totalorder %s337_s22, %s1723_s24  ;;  %p1732_p2 = scmp.lt.s32.totalorder %s1723_s24, %s1723_s24 }
  0x3d   : > { %p1726_p12 = pnand %p1724_p11, %p2079_p9  ;;  %p1733_p3 = por %p1732_p2, %p1731_p0 }
  0x3f   : > { %p1727_p13 = pneg %p1726_p12 }
  0x41   : > { %p1734_p6 = pnand %p1733_p3, %p1727_p13 }
  0x43   : > { %1737 = shalt.err (!%p1734_p6)
}
  0x44   : > { %s2398_s9 = smov 64   ;;  %s2399_s19 = smov 4  }
  0x45   : > { %1497 = dma.hbm_to_vmem [thread:$0]  (!%p2067_p7), %s2389_s6, 1024, %s337_s22, [#allocation10], %s2398_s9, %s2398_s9, %s2399_s19  }
  0x46   : > { %s1954_s23 = smov [#allocation3]   ;;  %s1738_s29 = scalar_lea.hbm %s2383_s0, 256 }
  0x47   : > { %s294_s25 = sshll.u32 %s1954_s23, 4  ;;  %p1739_p1 = scmp.ne.s32.totalorder %s2383_s0, %s1738_s29  ;;  %s295_s25 = int_to_ptr.vmem [resolvable:$true] %s294_s25 }
  0x48   : > { %p1745_p8 = scmp.lt.u32.totalorder %s1738_s29, %s2383_s0 }
  0x49   : > { %p1741_p4 = pnand %p1739_p1, %p2079_p9 }
  0x4b   : > { %p1742_p5 = pneg %p1741_p4 }
  0x4d   : > { %p1747_p10 = pnand %p1745_p8, %p1742_p5 }
  0x4f   : > { %1750 = shalt.err (!%p1747_p10)
}
  0x50   : > { %s1751_s22 = scalar_lea.vmem %s295_s25, 256  ;;  %p1759_p0 = scmp.lt.s32.totalorder %s295_s25, %s295_s25 }
  0x51   : > { %p1752_p11 = scmp.ne.s32.totalorder %s295_s25, %s1751_s22  ;;  %p1760_p2 = scmp.lt.s32.totalorder %s1751_s22, %s1751_s22 }
  0x53   : > { %p1754_p12 = pnand %p1752_p11, %p2079_p9  ;;  %p1761_p3 = por %p1760_p2, %p1759_p0 }
  0x55   : > { %p1755_p13 = pneg %p1754_p12 }
  0x57   : > { %p1762_p6 = pnand %p1761_p3, %p1755_p13 }
  0x59   : > { %1765 = shalt.err (!%p1762_p6)
}
  0x5a   : > { %s1955_s8 = smov 128   ;;  %s1956_s21 = smov 8  }
  0x5b   : > { %1488 = dma.hbm_to_vmem [thread:$0]  (!%p2067_p7), %s2383_s0, 256, %s295_s25, [#allocation4], %s1955_s8, %s1955_s8, %s1956_s21  }
  0x5c   : > { %s1957_s26 = smov [#allocation8]   ;;  %s1766_s18 = scalar_lea.hbm %s2385_s2, 1024 }
  0x5d   : > { %s320_s27 = sshll.u32 %s1957_s26, 4  ;;  %p1767_p1 = scmp.ne.s32.totalorder %s2385_s2, %s1766_s18  ;;  %s321_s27 = int_to_ptr.vmem [resolvable:$true] %s320_s27 }
  0x5e   : > { %p1773_p8 = scmp.lt.u32.totalorder %s1766_s18, %s2385_s2 }
  0x5f   : > { %p1769_p4 = pnand %p1767_p1, %p2079_p9 }
  0x61   : > { %p1770_p5 = pneg %p1769_p4 }
  0x63   : > { %p1775_p10 = pnand %p1773_p8, %p1770_p5 }
  0x65   : > { %1778 = shalt.err (!%p1775_p10)
}
  0x66   : > { %s1779_s25 = scalar_lea.vmem %s321_s27, 1024  ;;  %p1787_p0 = scmp.lt.s32.totalorder %s321_s27, %s321_s27 }
  0x67   : > { %p1780_p11 = scmp.ne.s32.totalorder %s321_s27, %s1779_s25  ;;  %p1788_p2 = scmp.lt.s32.totalorder %s1779_s25, %s1779_s25 }
  0x69   : > { %p1782_p12 = pnand %p1780_p11, %p2079_p9  ;;  %p1789_p3 = por %p1788_p2, %p1787_p0 }
  0x6b   : > { %p1783_p13 = pneg %p1782_p12 }
  0x6d   : > { %p1790_p6 = pnand %p1789_p3, %p1783_p13 }
  0x6f   : > { %1793 = shalt.err (!%p1790_p6)
}
  0x70   : > { %s2408_s1 = smov 4   ;;  %s2409_s23 = smov 64  }
  0x71   : > { %1494 = dma.hbm_to_vmem [thread:$0]  (!%p2067_p7), %s2385_s2, 1024, %s321_s27, [#allocation7], %s2409_s23, %s2409_s23, %s2408_s1  }
  0x72   : > { %s36_s28 = sadd.s32 1, %s1942_s13  ;;  %s135_s20 = sadd.s32 1, %s1934_s11 }
  0x73   : > { %p37_p9 = scmp.ge.s32.totalorder %s36_s28, 2  ;;  %p142_p1 = scmp.ne.s32.totalorder %s1934_s11, %s1930_s10 }
  0x74   : > { %p143_p4 = scmp.eq.s32.totalorder %s1946_s14, 0  ;;  %p1506_p5 = scmp.lt.s32.totalorder %s1946_s14, 2 }
  0x75   : > { %s2427_s28 = smov (%p37_p9, %s36_s28), 0  ;;  %s353_s26 = sand.u32 1, %s1946_s14  }
  0x76   : > { %p144_p8 = por %p143_p4, %p142_p1  ;;  %s132_s29 = ssub.s32 %s1942_s13, %s2427_s28 }
  0x77   : > { %p133_p10 = scmp.eq.s32.totalorder %s132_s29, 0  ;;  %s355_s30 = sand.u32 1, %s1934_s11  }
  0x78   : > { %s1456_s18 = smul.u32 384, %s355_s30  ;;  %p2170_p11 = pnand %p1506_p5, %p144_p8 }
  0x79   : > { %s2175_s27 = scalar_select %p133_p10, %s1934_s11, %s135_s20  }
  0x7a   : > { %s1457_s22 = smul.u32 6144, %s1942_s13  ;;  %s357_s25 = scalar_lea.vmem [#allocation9], %s1456_s18 }
  0x7b   : > { %s364_s1 = sshll.u32 %s357_s25, 4  ;;  %s2185_s29 = scalar_lea.sflag [#allocation10], %s353_s26  ;;  %s2183_s1 = int_to_ptr.vmem [resolvable:$true] %s364_s1 }
  0x7c   : > { %s2181_s19 = scalar_lea.hbm %s2387_s4, %s1457_s22  ;;  %p1796_p12 = pneg %p2170_p11 }
  0x7d   : > { %s1794_s30 = scalar_lea.hbm %s2181_s19, 6144  ;;  %s1799_s22 = scalar_lea.hbm %s2387_s4, 12288 }
  0x7e   : > { %p1795_p7 = scmp.ne.s32.totalorder %s2181_s19, %s1794_s30  ;;  %p1800_p2 = scmp.lt.u32.totalorder %s2181_s19, %s2387_s4 }
  0x7f   : > { %p1801_p3 = scmp.lt.u32.totalorder %s1799_s22, %s1794_s30  ;;  %p1803_p9 = scmp.lt.u32.totalorder %s1794_s30, %s2181_s19 }
  0x80   : > { %p1797_p13 = pnand %p1796_p12, %p1795_p7 }
  0x81   : > { %p1802_p6 = por %p1801_p3, %p1800_p2 }
  0x82   : > { %p1798_p0 = pneg %p1797_p13 }
  0x83   : > { %p1804_p1 = por %p1803_p9, %p1802_p6 }
  0x85   : > { %p1805_p4 = pnand %p1804_p1, %p1798_p0 }
  0x87   : > { %1808 = shalt.err (!%p1805_p4)
}
  0x88   : > { %s1809_s26 = scalar_lea.vmem %s2183_s1, 6144  ;;  %s1958_s9 = smov [#allocation9]  }
  0x89   : > { %p1810_p5 = scmp.ne.s32.totalorder %s2183_s1, %s1809_s26  ;;  %s1814_s20 = sshll.u32 %s1958_s9, 4  ;;  %s1815_s20 = int_to_ptr.vmem [resolvable:$false] %s1814_s20 }
  0x8a   : > { %s1816_s18 = scalar_lea.vmem %s1815_s20, 12288  ;;  %p1817_p7 = scmp.lt.s32.totalorder %s2183_s1, %s1815_s20 }
  0x8b   : > { %p1812_p8 = pnand %p1810_p5, %p1796_p12  ;;  %p1818_p13 = scmp.lt.s32.totalorder %s1816_s18, %s1809_s26 }
  0x8d   : > { %p1813_p10 = pneg %p1812_p8  ;;  %p1819_p2 = por %p1818_p13, %p1817_p7 }
  0x8f   : > { %p1820_p3 = pnand %p1819_p2, %p1813_p10 }
  0x91   : > { %1823 = shalt.err (!%p1820_p3)
}
  0x92   : > { %1501 = dma.hbm_to_vmem [thread:$0]  (!%p2170_p11), %s2181_s19, 6144, %s2183_s1, %s2185_s29, %s1955_s8, %s1955_s8, %s1956_s21  }
  0x93   : > { %p2411_p12 = scmp.ne.s32.totalorder %s2404_s17, 0 }
  0x94   : > { %p2412_p0 = scmp.eq.s32.totalorder (!%p2411_p12), %s2047_s15, 0 }
  0x95   : > { %383 = sbr.rel (%p2411_p12) target bundleno = 1038 (0x40e), region = 52 }
  0x9c   : > { %1901 = dma.done.wait (%p2412_p0), [#allocation4], 256   ;;  %p2413_p6 = pmov %p2412_p0 }
  0x9d   : > { %p2414_p9 = pmov %p2412_p0 }
  0x9e   : > { %1903 = vsyncadd (%p2413_p6), [#allocation4], 4294967040 }
  0x9f   : > { %1905 = dma.done.wait (%p2414_p9), [#allocation7], 1408   ;;  %p2415_p1 = pmov %p2412_p0 }
  0xa0   : > { %s397_s24 = sand.u32 1, %s2047_s15   ;;  %s399_s8 = sand.u32 1, %s1930_s10  }
  0xa1   : > { %1907 = vsyncadd (%p2415_p1), [#allocation7], 4294965888  ;;  %s1458_s21 = smul.u32 384, %s399_s8  ;;  %s398_s17 = scalar_lea.sflag [#allocation10], %s397_s24 }
  0xa2   : > { %p2416_p11 = scmp.ne.s32.totalorder %s2403_s16, 0 }
  0xa3   : > { %s2228_s1 = scalar_lea.vmem [#allocation9], %s1458_s21 }
  0xa4   : > { %1909 = dma.done.wait (%p2416_p11), %s398_s17, 6144  }
  0xa5   : > { %1911 = vsyncadd (%p2416_p11), %s398_s17, 4294961152  ;;  %p2417_p4 = pmov %p2412_p0 }
  0xa6   : > { %p2418_p5 = pmov %p2412_p0 }
  0xa7   : > { %1913 = dma.done.wait (%p2417_p4), [#allocation10], 1024  }
  0xa8   : > { %1915 = vsyncadd (%p2418_p5), [#allocation10], 4294966272  ;;  %p440_p8 = scmp.lt.s32.totalorder %s1938_s12, 1  ;;  %p1311_p10 = scmp.ne.s32.totalorder %s1938_s12, 0 }
  0xa9   : > { %v1582_v0 = vld [vmem:[#allocation8] sm:$0xff] (!%p1311_p10)   ;;  %v1959_v1 = vmov (!%p1311_p10), 0.0   ;;  %v1583_v2 = vld [vmem:[#allocation8 + $0x8] sm:$0xff] (!%p1311_p10)   ;;  %vm1960_vm0 = vmmov (!%p1311_p10), 0   ;;  %v1584_v3 = vld [vmem:[#allocation8 + $0x10] sm:$0xff] (!%p1311_p10)  }
  0xaa   : > { %s441_s19 = scalar_select %p440_p8, %s1938_s12, 1 }
  0xab   : > { %450 = sbr.rel (%p1311_p10) target bundleno = 420 (0x1a4), region = 76  ;;  %1408 = vmatprep.subr.bf16.mxu0 (!%p1311_p10), %v1959_v1  ;;  %1424 = vmatprep.mubr.msk.bf16.mxu0 (!%p1311_p10), %vm1960_vm0, %v1959_v1  ;;  %v1585_v4 = vld [vmem:[#allocation8 + $0x18] sm:$0xff] (!%p1311_p10)   ;;  %v1586_v5 = vld [vmem:[#allocation8 + $0x20] sm:$0xff] (!%p1311_p10)   ;;  %v1587_v6 = vld [vmem:[#allocation8 + $0x28] sm:$0xff] (!%p1311_p10)  }
  0xac   : > { %s1310_s29 = sshll.u32 %s441_s19, 1  ;;  %1409 = vmatpush3.bf16.msra.mxu0 (!%p1311_p10), %v1582_v0  ;;  %v1588_v7 = vld [vmem:[#allocation8 + $0x30] sm:$0xff] (!%p1311_p10)   ;;  %v1589_v8 = vld [vmem:[#allocation8 + $0x38] sm:$0xff] (!%p1311_p10)   ;;  %v452_v10 = vld [vmem:[#allocation3 + $0x8] sm:$0xff] (!%p1311_p10) }
  0xad   : > { %s2243_s25 = scalar_lea.vmem %s2388_s5, %s1310_s29  ;;  %1410 = vmatprep.subr.bf16.mxu0 (!%p1311_p10), %v1959_v1  ;;  %v451_v9 = vld [vmem:[#allocation3] sm:$0xff] (!%p1311_p10)  ;;  %v1312_v12 = vld [vmem:[%s2386_s3] ss:$0 sm:$0xff] (!%p1311_p10) }
  0xae   : > { %v453_v11 = vpack.c.bf16 (!%p1311_p10), %v452_v10, %v451_v9 }
  0xb0   : > { %1411 = vmatpush3.bf16.msra.mxu0 (!%p1311_p10), %v1583_v2 }
  0xb1   : > { %1412 = vmatprep.subr.bf16.mxu0 (!%p1311_p10), %v1959_v1 }
  0xb4   : > { %1413 = vmatpush3.bf16.msra.mxu0 %v1584_v3 }
  0xb5   : > { %1414 = vmatprep.subr.bf16.mxu0 %v1959_v1 }
  0xb8   : > { %1415 = vmatpush3.bf16.msra.mxu0 %v1585_v4 }
  0xb9   : > { %1416 = vmatprep.subr.bf16.mxu0 %v1959_v1 }
  0xbc   : > { %1417 = vmatpush3.bf16.msra.mxu0 %v1586_v5 }
  0xbd   : > { %1418 = vmatprep.subr.bf16.mxu0 %v1959_v1 }
  0xc0   : > { %1419 = vmatpush3.bf16.msra.mxu0 %v1587_v6 }
  0xc1   : > { %1420 = vmatprep.subr.bf16.mxu0 %v1959_v1 }
  0xc4   : > { %1421 = vmatpush3.bf16.msra.mxu0 %v1588_v7 }
  0xc5   : > { %1422 = vmatprep.subr.bf16.mxu0 %v1959_v1 }
  0xc8   : > { %1423 = vmatpush3.bf16.msra.mxu0 %v1589_v8 }
  0xcb   : > { %1425 = vmatmul.mubr.bf16.vlgmr.msra.gmra.mrb[0].mxu0 %v453_v11 }
 0x19e   : > { %v559_v13 = vpop.f32.mrb[0].mxu0 }
 0x19f   : > { %v560_v14 = vadd.f32 %v1312_v12, %v559_v13  ;;  %v1426_v15 = vpop.f32.mrb[1].mxu0 }
 0x1a0   : > { %v562_v16 = vpop.f32.mrb[2].mxu0 }
 0x1a1   : > { %566 = vst [vmem:[#allocation2] sm:$0xff] %v560_v14  ;;  %v563_v17 = vadd.f32 %v1312_v12, %v562_v16  ;;  %v1427_v18 = vpop.f32.mrb[3].mxu0 }
 0x1a3   : > { %567 = vst [vmem:[#allocation2 + $0x8] sm:$0xff] %v563_v17 }
 0x1a4 PF: > { %v1590_v19 = vld [vmem:[%s2228_s1 + $0x4] ss:$8 sps:$4 sm:$0xff]   ;;  %v1592_v20 = vld [vmem:[%s2228_s1] ss:$8 sps:$4 sm:$0xff]   ;;  %v1961_v21 = vmov 0   ;;  %v572_v44 = vlaneseq  ;;  %p1374_p7 = scmp.ne.s32.totalorder %s1938_s12, 1 }
 0x1a5   : > { %983 = vmatprep.mubr.bf16.mxu0 %v1961_v21  ;;  %908 = vmatprep.subr.bf16.mxu1 %v1590_v19  ;;  %v1593_v22 = vld [vmem:[%s2228_s1 + $0x14] ss:$8 sps:$4 sm:$0xff]   ;;  %v1595_v23 = vld [vmem:[%s2228_s1 + $0x10] ss:$8 sps:$4 sm:$0xff]   ;;  %v1596_v24 = vld [vmem:[%s2228_s1 + $0x24] ss:$8 sps:$4 sm:$0xff]  }
 0x1a6   : > { %909 = vmatpush1.bf16.msra.mxu1 %v1592_v20  ;;  %v1598_v25 = vld [vmem:[%s2228_s1 + $0x20] ss:$8 sps:$4 sm:$0xff]   ;;  %v1599_v26 = vld [vmem:[%s2228_s1 + $0x34] ss:$8 sps:$4 sm:$0xff]   ;;  %v1601_v27 = vld [vmem:[%s2228_s1 + $0x30] ss:$8 sps:$4 sm:$0xff]  }
 0x1a7   : > { %910 = vmatprep.subr.bf16.mxu1 %v1593_v22  ;;  %v1614_v28 = vld [vmem:[%s2228_s1 + $0x104] ss:$8 sps:$4 sm:$0xff]   ;;  %v1618_v30 = vld [vmem:[%s2228_s1 + $0x100] ss:$8 sps:$4 sm:$0xff]   ;;  %v1620_v31 = vld [vmem:[%s2228_s1 + $0x114] ss:$8 sps:$4 sm:$0xff]  }
 0x1a8   : > { %v1602_v29 = vld [vmem:[%s2228_s1 + $0x44] ss:$8 sps:$4 sm:$0xff]   ;;  %951 = vmatprep.subr.bf16.mxu0 %v1614_v28  ;;  %v1604_v32 = vld [vmem:[%s2228_s1 + $0x40] ss:$8 sps:$4 sm:$0xff]   ;;  %v1605_v33 = vld [vmem:[%s2228_s1 + $0x54] ss:$8 sps:$4 sm:$0xff]  }
 0x1a9   : > { %952 = vmatpush1.bf16.msra.mxu0 %v1618_v30  ;;  %v1624_v34 = vld [vmem:[%s2228_s1 + $0x110] ss:$8 sps:$4 sm:$0xff]   ;;  %v1626_v35 = vld [vmem:[%s2228_s1 + $0x124] ss:$8 sps:$4 sm:$0xff]   ;;  %v1630_v37 = vld [vmem:[%s2228_s1 + $0x120] ss:$8 sps:$4 sm:$0xff]  }
 0x1aa   : > { %911 = vmatpush1.bf16.msra.mxu1 %v1595_v23  ;;  %953 = vmatprep.subr.bf16.mxu0 %v1620_v31  ;;  %v1607_v36 = vld [vmem:[%s2228_s1 + $0x50] ss:$8 sps:$4 sm:$0xff]   ;;  %v1632_v38 = vld [vmem:[%s2228_s1 + $0x134] ss:$8 sps:$4 sm:$0xff]   ;;  %v1608_v39 = vld [vmem:[%s2228_s1 + $0x64] ss:$8 sps:$4 sm:$0xff]  }
 0x1ab   : > { %912 = vmatprep.subr.bf16.mxu1 %v1596_v24  ;;  %v1636_v40 = vld [vmem:[%s2228_s1 + $0x130] ss:$8 sps:$4 sm:$0xff]   ;;  %v1610_v41 = vld [vmem:[%s2228_s1 + $0x60] ss:$8 sps:$4 sm:$0xff]   ;;  %v1638_v42 = vld [vmem:[%s2228_s1 + $0x144] ss:$8 sps:$4 sm:$0xff]  }
 0x1ac   : > { %v1611_v43 = vld [vmem:[%s2228_s1 + $0x74] ss:$8 sps:$4 sm:$0xff]   ;;  %v1613_v45 = vld [vmem:[%s2228_s1 + $0x70] ss:$8 sps:$4 sm:$0xff]   ;;  %v1642_v46 = vld [vmem:[%s2228_s1 + $0x140] ss:$8 sps:$4 sm:$0xff]  }
 0x1ad   : > { %954 = vmatpush1.bf16.msra.mxu0 %v1624_v34  ;;  %v1644_v47 = vld [vmem:[%s2228_s1 + $0x154] ss:$8 sps:$4 sm:$0xff]   ;;  %v1616_v48 = vld [vmem:[%s2228_s1 + $0x84] ss:$8 sps:$4 sm:$0xff]   ;;  %v2277_v49 = vshrl.u32 %v572_v44, 7  ;;  %vm1963_vm3 = vmmov (!%p1374_p7), 0  }
 0x1ae   : > { %913 = vmatpush1.bf16.msra.mxu1 %v1598_v25  ;;  %955 = vmatprep.subr.bf16.mxu0 %v1626_v35  ;;  %v1648_v50 = vld [vmem:[%s2228_s1 + $0x150] ss:$8 sps:$4 sm:$0xff]   ;;  %v1619_v51 = vld [vmem:[%s2228_s1 + $0x80] ss:$8 sps:$4 sm:$0xff]   ;;  %v1622_v52 = vld [vmem:[%s2228_s1 + $0x94] ss:$8 sps:$4 sm:$0xff]  }
 0x1af   : > { %914 = vmatprep.subr.bf16.mxu1 %v1599_v26  ;;  %v1650_v53 = vld [vmem:[%s2228_s1 + $0x164] ss:$8 sps:$4 sm:$0xff]   ;;  %v2285_v55 = vld [vmem:[#allocation2 + $0x8] sm:$0xff]  ;;  %vm581_vm1 = vcmp.lt.s32.totalorder %v2277_v49, 7  ;;  %v1654_v56 = vld [vmem:[%s2228_s1 + $0x160] ss:$8 sps:$4 sm:$0xff]  }
 0x1b0   : > { %v2283_v54 = vld [vmem:[#allocation2] sm:$0xff]  ;;  %v580_v60 = vrot.slane %v2285_v55, 1  ;;  %v1625_v61 = vld [vmem:[%s2228_s1 + $0x90] ss:$8 sps:$4 sm:$0xff]   ;;  %v1656_v62 = vld [vmem:[%s2228_s1 + $0x174] ss:$8 sps:$4 sm:$0xff]  }
 0x1b1   : > { %956 = vmatpush1.bf16.msra.mxu0 %v1630_v37  ;;  %v578_v57 = vpack.c.bf16 %v2285_v55, %v2283_v54  ;;  %v1664_v58 = vld [vmem:[#allocation6 + $0x4] ss:$12 sps:$4 sm:$0xff]   ;;  %v579_v59 = vrot.slane %v2283_v54, 1  ;;  %v1665_v4 = vld [vmem:[#allocation6 + $0x8] ss:$12 sps:$4 sm:$0xff]   ;;  %v570_v14 = vrot.slane %v2283_v54, 7 }
 0x1b2   : > { %915 = vmatpush1.bf16.msra.mxu1 %v1601_v27  ;;  %957 = vmatprep.subr.bf16.mxu0 %v1632_v38  ;;  %v1628_v0 = vld [vmem:[%s2228_s1 + $0xa4] ss:$8 sps:$4 sm:$0xff]   ;;  %v1660_v5 = vld [vmem:[%s2228_s1 + $0x170] ss:$8 sps:$4 sm:$0xff]   ;;  %v1631_v6 = vld [vmem:[%s2228_s1 + $0xa0] ss:$8 sps:$4 sm:$0xff]  }
 0x1b3   : > { %916 = vmatprep.subr.bf16.mxu1 %v1602_v29  ;;  %v606_v63 = vmul.bf16 %v1664_v58, %v578_v57  ;;  %v582_v1 = vsel %vm581_vm1, %v579_v59, %v580_v60  ;;  %v583_v2 = vsel %vm581_vm1, %v580_v60, %v579_v59  ;;  %v1634_v7 = vld [vmem:[%s2228_s1 + $0xb4] ss:$8 sps:$4 sm:$0xff]   ;;  %v1637_v9 = vld [vmem:[%s2228_s1 + $0xb0] ss:$8 sps:$4 sm:$0xff]   ;;  %v1640_v10 = vld [vmem:[%s2228_s1 + $0xc4] ss:$8 sps:$4 sm:$0xff]  }
 0x1b4   : > { %v584_v3 = vpack.c.bf16 %v583_v2, %v582_v1  ;;  %v1643_v11 = vld [vmem:[%s2228_s1 + $0xc0] ss:$8 sps:$4 sm:$0xff]   ;;  %v1646_v12 = vld [vmem:[%s2228_s1 + $0xd4] ss:$8 sps:$4 sm:$0xff]   ;;  %v1649_v13 = vld [vmem:[%s2228_s1 + $0xd0] ss:$8 sps:$4 sm:$0xff]  }
 0x1b5   : > { %958 = vmatpush1.bf16.msra.mxu0 %v1636_v40  ;;  %940 = vmatprep.mubr.bf16.mxu1 %v606_v63  ;;  %v571_v15 = vrot.slane %v2285_v55, 7  ;;  %v1652_v16 = vld [vmem:[%s2228_s1 + $0xe4] ss:$8 sps:$4 sm:$0xff]   ;;  %vm574_vm2 = vcmp.lt.s32.totalorder %v2277_v49, 1  ;;  %v1655_v17 = vld [vmem:[%s2228_s1 + $0xe0] ss:$8 sps:$4 sm:$0xff]  }
 0x1b6   : > { %917 = vmatpush1.bf16.msra.mxu1 %v1604_v32  ;;  %959 = vmatprep.subr.bf16.mxu0 %v1638_v42  ;;  %v607_v8 = vmul.bf16 %v1665_v4, %v584_v3  ;;  %v1658_v20 = vld [vmem:[%s2228_s1 + $0xf4] ss:$8 sps:$4 sm:$0xff]   ;;  %v1661_v23 = vld [vmem:[%s2228_s1 + $0xf0] ss:$8 sps:$4 sm:$0xff]   ;;  %v660_v29 = vsub.s32 0, %v2277_v49  ;;  %v664_v31 = vsub.s32 1, %v2277_v49 }
 0x1b7   : > { %918 = vmatprep.subr.bf16.mxu1 %v1605_v33  ;;  %v575_v18 = vsel %vm574_vm2, %v570_v14, %v571_v15  ;;  %v576_v19 = vsel %vm574_vm2, %v571_v15, %v570_v14  ;;  %v1662_v21 = vld [vmem:[#allocation6] ss:$12 sps:$4 sm:$0xff]   ;;  %v1962_v63 = vmov (!%p1374_p7), 0.0   ;;  %v1677_v1 = vld [vmem:[#allocation11 + $0x18] sm:$0xff] (!%p1374_p7)  }
 0x1b8   : > { %v577_v22 = vpack.c.bf16 %v575_v18, %v576_v19  ;;  %v656_v30 = vld [vmem:[%s2243_s25] sm:$0x3]  ;;  %v1680_v3 = vld [vmem:[#allocation11 + $0x30] sm:$0xff] (!%p1374_p7)   ;;  %v1681_v4 = vld [vmem:[#allocation11 + $0x38] sm:$0xff] (!%p1374_p7)  }
 0x1b9   : > { %960 = vmatpush1.bf16.msra.mxu0 %v1642_v46  ;;  %v661_v32 = vrot.slane %v656_v30, %v660_v29  ;;  %v665_v33 = vrot.slane %v656_v30, %v664_v31  ;;  %v1679_v2 = vld [vmem:[#allocation11 + $0x28] sm:$0xff] (!%p1374_p7)  }
 0x1ba   : > { %919 = vmatpush1.bf16.msra.mxu1 %v1607_v36  ;;  %961 = vmatprep.subr.bf16.mxu0 %v1644_v47  ;;  %v605_v24 = vmul.bf16 %v1662_v21, %v577_v22 }
 0x1bb   : > { %920 = vmatprep.subr.bf16.mxu1 %v1608_v39 }
 0x1bd   : > { %962 = vmatpush1.bf16.msra.mxu0 %v1648_v50 }
 0x1be   : > { %921 = vmatpush1.bf16.msra.mxu1 %v1610_v41  ;;  %963 = vmatprep.subr.bf16.mxu0 %v1650_v53 }
 0x1bf   : > { %922 = vmatprep.subr.bf16.mxu1 %v1611_v43 }
 0x1c1   : > { %964 = vmatpush1.bf16.msra.mxu0 %v1654_v56 }
 0x1c2   : > { %923 = vmatpush1.bf16.msra.mxu1 %v1613_v45  ;;  %965 = vmatprep.subr.bf16.mxu0 %v1656_v62  ;;  %v1674_v62 = vld [vmem:[#allocation11] sm:$0xff] (!%p1374_p7)  }
 0x1c3   : > { %924 = vmatprep.subr.bf16.mxu1 %v1616_v48 }
 0x1c5   : > { %966 = vmatpush1.bf16.msra.mxu0 %v1660_v5 }
 0x1c6   : > { %925 = vmatpush1.bf16.msra.mxu1 %v1619_v51  ;;  %1428 = vmatprep.subr.bf16.mxu0 (!%p1374_p7), %v1962_v63 }
 0x1c7   : > { %926 = vmatprep.subr.bf16.mxu1 %v1622_v52 }
 0x1c8   : > { %984 = vmatmul.mubr.bf16.vlgmr.msra.gmra.mrb[0].mxu0 %v607_v8  ;;  %v1133_v8 = vld [vmem:[#allocation3] sm:$0xff] (!%p1374_p7) }
 0x1c9   : > { %1429 = vmatpush3.bf16.msra.mxu0 (!%p1374_p7), %v1674_v62  ;;  %1444 = vmatprep.mubr.msk.bf16.mxu0 (!%p1374_p7), %vm1963_vm3, %v1962_v63 }
 0x1ca   : > { %927 = vmatpush1.bf16.msra.mxu1 %v1625_v61  ;;  %1430 = vmatprep.subr.bf16.mxu0 (!%p1374_p7), %v1962_v63 }
 0x1cb   : > { %928 = vmatprep.subr.bf16.mxu1 %v1628_v0  ;;  %v1675_v0 = vld [vmem:[#allocation11 + $0x8] sm:$0xff] (!%p1374_p7)  }
 0x1cd   : > { %1431 = vmatpush3.bf16.msra.mxu0 (!%p1374_p7), %v1675_v0 }
 0x1ce   : > { %929 = vmatpush1.bf16.msra.mxu1 %v1631_v6  ;;  %1432 = vmatprep.subr.bf16.mxu0 (!%p1374_p7), %v1962_v63  ;;  %v1375_v6 = vld [vmem:[%s2390_s7] ss:$0 sm:$0xff] (!%p1374_p7) }
 0x1cf   : > { %930 = vmatprep.subr.bf16.mxu1 %v1634_v7 }
 0x1d2   : > { %931 = vmatpush1.bf16.msra.mxu1 %v1637_v9 }
 0x1d3   : > { %932 = vmatprep.subr.bf16.mxu1 %v1640_v10 }
 0x1d6   : > { %933 = vmatpush1.bf16.msra.mxu1 %v1643_v11 }
 0x1d7   : > { %934 = vmatprep.subr.bf16.mxu1 %v1646_v12  ;;  %v1134_v12 = vld [vmem:[#allocation3 + $0x8] sm:$0xff] (!%p1374_p7) }
 0x1da   : > { %935 = vmatpush1.bf16.msra.mxu1 %v1649_v13 }
 0x1db   : > { %936 = vmatprep.subr.bf16.mxu1 %v1652_v16 }
 0x1de   : > { %937 = vmatpush1.bf16.msra.mxu1 %v1655_v17 }
 0x1df   : > { %938 = vmatprep.subr.bf16.mxu1 %v1658_v20 }
 0x1e2   : > { %939 = vmatpush1.bf16.msra.mxu1 %v1661_v23 }
 0x1e5   : > { %941 = vmatmul.mubr.bf16.vlgmr.msra.gmra.mrb[0].mxu1 %v605_v24 }
 0x29b   : > { %v985_v25 = vpop.f32.mrb[0].mxu0 }
 0x29c   : > { %v987_v26 = vpop.f32.mrb[1].mxu0 }
 0x29d   : > { %v989_v27 = vpop.f32.mrb[2].mxu0 }
 0x29e   : > { %v991_v28 = vpop.f32.mrb[3].mxu0 }
 0x2b8   : > { %v942_v34 = vpop.f32.mrb[0].mxu1 }
 0x2b9   : > { %v943_v35 = vadd.f32 %v942_v34, %v661_v32  ;;  %v944_v36 = vpop.f32.mrb[1].mxu1 }
 0x2ba   : > { %v945_v37 = vadd.f32 %v944_v36, %v665_v33  ;;  %v946_v38 = vpop.f32.mrb[2].mxu1 }
 0x2bb   : > { %v986_v39 = vadd.f32 %v985_v25, %v943_v35  ;;  %v947_v40 = vadd.f32 %v946_v38, %v661_v32  ;;  %v948_v41 = vpop.f32.mrb[3].mxu1 }
 0x2bc   : > { %v988_v42 = vadd.f32 %v987_v26, %v945_v37  ;;  %v949_v43 = vadd.f32 %v948_v41, %v665_v33 }
 0x2bd   : > { %v990_v44 = vadd.f32 %v989_v27, %v947_v40 }
 0x2be   : > { %v1372_v45 = vmul.f32 -1.442695, %v988_v42  ;;  %v992_v46 = vadd.f32 %v991_v28, %v949_v43 }
 0x2c0   : > { %1666 = vpow2.f32 %v1372_v45  ;;  %v1373_v47 = vmul.f32 -1.442695, %v992_v46 }
 0x2c2   : > { %1668 = vpow2.f32 %v1373_v47 }
 0x2ca   : > { %v1667_v48 = vpop.eup %1666 }
 0x2cb   : > { %v1000_v49 = vadd.f32 1.0, %v1667_v48 }
 0x2cc   : > { %v1669_v50 = vpop.eup %1668 }
 0x2cd   : > { %1670 = vrcp.f32 %v1000_v49  ;;  %v1001_v51 = vadd.f32 1.0, %v1669_v50 }
 0x2cf   : > { %1672 = vrcp.f32 %v1001_v51 }
 0x2d7   : > { %v1671_v52 = vpop.eup %1670 }
 0x2d8   : > { %v1006_v53 = vmul.f32 %v1671_v52, %v986_v39 }
 0x2d9   : > { %v1673_v56 = vpop.eup %1672 }
 0x2da   : > { %v1008_v57 = vadd.f32 %v1006_v53, %v2283_v54  ;;  %v1007_v58 = vmul.f32 %v1673_v56, %v990_v44  ;;  %1017 = sbr.rel (%p1374_p7) target bundleno = 975 (0x3cf), region = 80  ;;  %v1676_v54 = vld [vmem:[#allocation11 + $0x10] sm:$0xff] (!%p1374_p7)  }
 0x2db   : > { %1433 = vmatpush3.bf16.msra.mxu0 (!%p1374_p7), %v1676_v54 }
 0x2dc   : > { %v1010_v59 = vmul.f32 0.70710677, %v1008_v57  ;;  %v1009_v60 = vadd.f32 %v1007_v58, %v2285_v55  ;;  %1434 = vmatprep.subr.bf16.mxu0 (!%p1374_p7), %v1962_v63  ;;  %v1678_v55 = vld [vmem:[#allocation11 + $0x20] sm:$0xff] (!%p1374_p7)  }
 0x2de   : > { %1012 = vst [vmem:[#allocation2] sm:$0xff] %v1010_v59  ;;  %v1011_v61 = vmul.f32 0.70710677, %v1009_v60 }
 0x2df   : > { %1435 = vmatpush3.bf16.msra.mxu0 (!%p1374_p7), %v1677_v1 }
 0x2e0   : > { %1013 = vst [vmem:[#allocation2 + $0x8] sm:$0xff] %v1011_v61  ;;  %1436 = vmatprep.subr.bf16.mxu0 (!%p1374_p7), %v1962_v63  ;;  %v1018_v5 = vpack.c.bf16 (!%p1374_p7), %v1011_v61, %v1010_v59 }
 0x2e3   : > { %1437 = vmatpush3.bf16.msra.mxu0 %v1678_v55 }
 0x2e4   : > { %1438 = vmatprep.subr.bf16.mxu0 %v1962_v63 }
 0x2e7   : > { %1439 = vmatpush3.bf16.msra.mxu0 %v1679_v2 }
 0x2e8   : > { %1440 = vmatprep.subr.bf16.mxu0 %v1962_v63 }
 0x2eb   : > { %1441 = vmatpush3.bf16.msra.mxu0 %v1680_v3 }
 0x2ec   : > { %1442 = vmatprep.subr.bf16.mxu0 %v1962_v63 }
 0x2ef   : > { %1443 = vmatpush3.bf16.msra.mxu0 %v1681_v4 }
 0x2f2   : > { %1445 = vmatmul.mubr.bf16.vlgmr.msra.gmra.mrb[0].mxu0 %v1018_v5 }
 0x3c5   : > { %v1124_v7 = vpop.f32.mrb[0].mxu0 }
 0x3c6   : > { %v1125_v9 = vadd.f32 %v1375_v6, %v1124_v7  ;;  %v1446_v10 = vpop.f32.mrb[1].mxu0 }
 0x3c7   : > { %v1127_v11 = vpop.f32.mrb[2].mxu0 }
 0x3c8   : > { %1131 = vst [vmem:[#allocation12] sm:$0xff] %v1125_v9  ;;  %v1135_v13 = vadd.f32 %v1133_v8, %v1125_v9  ;;  %v1128_v14 = vadd.f32 %v1375_v6, %v1127_v11  ;;  %v1447_v15 = vpop.f32.mrb[3].mxu0 }
 0x3ca   : > { %v1137_v16 = vmul.f32 0.70710677, %v1135_v13  ;;  %1132 = vst [vmem:[#allocation12 + $0x8] sm:$0xff] %v1128_v14  ;;  %v1136_v17 = vadd.f32 %v1134_v12, %v1128_v14 }
 0x3cc   : > { %1139 = vst [vmem:[#allocation13] sm:$0xff] %v1137_v16  ;;  %v1138_v18 = vmul.f32 0.70710677, %v1136_v17 }
 0x3ce   : > { %1140 = vst [vmem:[#allocation13 + $0x8] sm:$0xff] %v1138_v18 }
 0x3cf PF: > { %p1511_p13 = scmp.eq.s32.totalorder %s2047_s15, 1  ;;  %s1964_s9 = smov [#allocation12]  }
 0x3d0   : > { %s1150_s20 = sshll.u32 %s1964_s9, 4  ;;  %s1151_s20 = int_to_ptr.vmem [resolvable:$true] %s1150_s20 }
 0x3d1   : > { %s1824_s18 = scalar_lea.vmem %s1151_s20, 256  ;;  %p1831_p0 = scmp.lt.s32.totalorder %s1151_s20, %s1151_s20 }
 0x3d2   : > { %p1825_p2 = scmp.ne.s32.totalorder %s1151_s20, %s1824_s18  ;;  %p1832_p6 = scmp.lt.s32.totalorder %s1824_s18, %s1824_s18 }
 0x3d4   : > { %p1826_p3 = pnand %p1825_p2, %p1511_p13  ;;  %p1833_p9 = por %p1832_p6, %p1831_p0 }
 0x3d6   : > { %p1827_p12 = pneg %p1826_p3 }
 0x3d8   : > { %p1834_p1 = pnand %p1833_p9, %p1827_p12 }
 0x3da   : > { %1837 = shalt.err (!%p1834_p1)
}
 0x3db   : > { %s2419_s21 = sld [smem:[#allocation22_spill]] }
 0x3e1   : > { %s1838_s17 = scalar_lea.hbm %s2419_s21, 256 }
 0x3e2   : > { %p1839_p11 = scmp.ne.s32.totalorder %s2419_s21, %s1838_s17  ;;  %p1844_p8 = scmp.lt.u32.totalorder %s1838_s17, %s2419_s21 }
 0x3e4   : > { %p1840_p4 = pnand %p1839_p11, %p1511_p13 }
 0x3e6   : > { %p1841_p5 = pneg %p1840_p4 }
 0x3e8   : > { %p1846_p10 = pnand %p1844_p8, %p1841_p5 }
 0x3ea   : > { %1849 = shalt.err (!%p1846_p10)
}
 0x3eb   : > { %s1965_s22 = smov 128   ;;  %s1966_s25 = smov 8  }
 0x3ec   : > { %1478 = dma.vmem_to_hbm [thread:$0]  (%p1511_p13), %s1151_s20, 256, %s2419_s21, [#allocation5], %s1965_s22, %s1965_s22, %s1966_s25  }
 0x3ed   : > { %s1967_s12 = smov [#allocation13]  }
 0x3ee   : > { %s1166_s26 = sshll.u32 %s1967_s12, 4  ;;  %s1167_s26 = int_to_ptr.vmem [resolvable:$true] %s1166_s26 }
 0x3ef   : > { %s1850_s9 = scalar_lea.vmem %s1167_s26, 256  ;;  %p1857_p12 = scmp.lt.s32.totalorder %s1167_s26, %s1167_s26 }
 0x3f0   : > { %p1851_p7 = scmp.ne.s32.totalorder %s1167_s26, %s1850_s9  ;;  %p1858_p0 = scmp.lt.s32.totalorder %s1850_s9, %s1850_s9 }
 0x3f2   : > { %p1852_p2 = pnand %p1851_p7, %p1511_p13  ;;  %p1859_p6 = por %p1858_p0, %p1857_p12 }
 0x3f4   : > { %p1853_p3 = pneg %p1852_p2 }
 0x3f6   : > { %p1860_p9 = pnand %p1859_p6, %p1853_p3 }
 0x3f8   : > { %1863 = shalt.err (!%p1860_p9)
}
 0x3f9   : > { %s2420_s8 = sld [smem:[#allocation23_spill]] }
 0x3ff   : > { %s1864_s17 = scalar_lea.hbm %s2420_s8, 256 }
 0x400   : > { %p1865_p1 = scmp.ne.s32.totalorder %s2420_s8, %s1864_s17  ;;  %p1870_p5 = scmp.lt.u32.totalorder %s1864_s17, %s2420_s8 }
 0x402   : > { %p1866_p11 = pnand %p1865_p1, %p1511_p13 }
 0x404   : > { %p1867_p4 = pneg %p1866_p11 }
 0x406   : > { %p1872_p8 = pnand %p1870_p5, %p1867_p4 }
 0x408   : > { %1875 = shalt.err (!%p1872_p8)
}
 0x409   : > { %1480 = dma.vmem_to_hbm [thread:$0]  (%p1511_p13), %s1167_s26, 256, %s2420_s8, [#allocation14], %s1965_s22, %s1965_s22, %s1966_s25  }
 0x40a   : > { %1917 = dma.done.wait (%p1511_p13), [#allocation5], 256  }
 0x40b   : > { %1919 = vsyncadd (%p1511_p13), [#allocation5], 4294967040 }
 0x40c   : > { %1921 = dma.done.wait (%p1511_p13), [#allocation14], 256  }
 0x40d   : > { %1923 = vsyncadd (%p1511_p13), [#allocation14], 4294967040 }
 0x40e PF: > { %s27_s14 = sadd.s32 1, %s1946_s14   ;;  %s2421_s30 = smov %s1930_s10 }
 0x40f   : > { %p24_p10 = scmp.ge.s32.totalorder %s27_s14, 4   ;;  %s2422_s10 = smov %s1934_s11 }
 0x410   : > { %s2423_s11 = smov %s2175_s27  ;;  %s2424_s12 = smov %s1942_s13 }
 0x411   : > { %s2425_s13 = smov %s2427_s28  ;;  %26 = sbr.rel (!%p24_p10) target bundleno = 12 (0xc), region = 128 }
 0x418   :  { %1186 = vsyncpa [#allocation4], 1 }
 0x419   :  { %1188 = vsyncpa [#allocation4 + $0x1], 1 }
 0x41a   :  { %1189 = vsyncpa [#allocation7], 1 }
 0x41b   :  { %1190 = vsyncpa [#allocation10], 1 }
 0x41c   :  { %1192 = vsyncpa [#allocation10 + $0x1], 1 }
 0x41d   :  { %1193 = vsyncpa [#allocation5], 1 }
 0x41e   :  { %1195 = vsyncpa [#allocation5 + $0x1], 1 }
 0x41f   :  { %1196 = vsyncpa [#allocation14], 1 }

</bundles_post_ra>
